<compile_context>
chip_gen: v7x
topology: tpu7x:2x2x1
jax: 0.10.0
libtpu: 0.0.40
codegen_flags: <defaults>
</compile_context>

<pallas_src>
import math
import functools

import jax
import jax.numpy as jnp
import numpy as np
from jax import lax
from jax.experimental import pallas as pl
from jax.experimental.pallas import tpu as pltpu


def _pe_kernel(x_ref, m_ref, d_ref, t_ref, invf_ref,
               ox_ref, om_ref, od_ref, *, scale):
    # t_ref: (BB, S, 1), invf_ref: (1, 1, D)  ->  ang: (BB, S, D)
    ang = t_ref[...] * invf_ref[...]
    lane = lax.broadcasted_iota(jnp.int32, ang.shape, dimension=2)
    pos = jnp.where(lane % 2 == 0, jnp.sin(ang), jnp.cos(ang))

    ox_ref[...] = (x_ref[...] * scale + pos).astype(ox_ref.dtype)
    om_ref[...] = (m_ref[...] * scale + pos).astype(om_ref.dtype)
    od_ref[...] = (d_ref[...] * scale + pos).astype(od_ref.dtype)


def positional_encoder_time_descriptor(x, m, delta, t, *, d_model, max_seq_len):
    B, S, D = x.shape
    assert D == d_model
    assert m.shape == x.shape and delta.shape == x.shape
    assert t.shape == (B, S)

    # Trace-time constant: inv_freq[i] = max_seq_len^(-2*(i//2)/d_model)
    hid = np.arange(D)
    inv_freq = (1.0 / np.power(float(max_seq_len),
                               2.0 * (hid // 2) / float(d_model))).astype(np.float32)
    inv_freq = jnp.asarray(inv_freq).reshape(1, 1, D)

    # Lift t to (B, S, 1) so its block satisfies the (8,128)-or-full-dim rule
    # and broadcasts against (1, 1, D) inside the kernel.
    t3 = t.astype(x.dtype).reshape(B, S, 1)

    # <=2 grid steps: keeps pipeline/launch overhead minimal on v5e/v6e while
    # still exposing 2 "parallel" steps for v7x's two TensorCores.
    BB = max(1, pl.cdiv(B, 2))
    n_blocks = pl.cdiv(B, BB)

    kernel = functools.partial(_pe_kernel, scale=math.sqrt(d_model))

    act_spec = pl.BlockSpec((BB, S, D), lambda b: (b, 0, 0))
    t_spec = pl.BlockSpec((BB, S, 1), lambda b: (b, 0, 0))
    const_spec = pl.BlockSpec((1, 1, D), lambda b: (0, 0, 0))

    out_sds = jax.ShapeDtypeStruct((B, S, D), x.dtype)

    return pl.pallas_call(
        kernel,
        out_shape=(out_sds, out_sds, out_sds),
        grid=(n_blocks,),
        in_specs=[act_spec, act_spec, act_spec, t_spec, const_spec],
        out_specs=(act_spec, act_spec, act_spec),
        compiler_params=pltpu.CompilerParams(dimension_semantics=("parallel",)),
    )(x, m, delta, t3, inv_freq)


def _reference_pe(x, m, delta, t, d_model, max_seq_len):
    """Pure numpy replica of the PyTorch forward (table built in f64, cast to f32)."""
    tn = np.asarray(t, dtype=np.float64)
    D = d_model
    hid = np.arange(D)
    denom = np.power(max_seq_len, 2 * (hid // 2) / d_model)          # (D,)
    table = tn[:, None, :] / denom[None, :, None]                    # (B, D, S)
    table[:, 0::2, :] = np.sin(table[:, 0::2, :])
    table[:, 1::2, :] = np.cos(table[:, 1::2, :])
    pos = np.transpose(table, (0, 2, 1)).astype(np.float32)          # (B, S, D)
    scale = math.sqrt(d_model)
    xn, mn, dn = (np.asarray(a, dtype=np.float32) for a in (x, m, delta))
    return xn * scale + pos, mn * scale + pos, dn * scale + pos


if __name__ == "__main__":
    B, S, D = 2, 8, 32
    max_seq_len = S

    key = jax.random.PRNGKey(0)
    kx, km, kd, kt = jax.random.split(key, 4)
    x = jax.random.normal(kx, (B, S, D), jnp.float32)
    m = (jax.random.uniform(km, (B, S, D)) > 0.5).astype(jnp.float32)   # mask-like input
    delta = jax.random.uniform(kd, (B, S, D), jnp.float32, 0.0, 1.0)
    # irregular (sorted) time stamps in [0, max_seq_len)
    t = jnp.sort(jax.random.uniform(kt, (B, S), jnp.float32, 0.0,
                                    float(max_seq_len)), axis=1)

    ox, om, od = positional_encoder_time_descriptor(
        x, m, delta, t, d_model=D, max_seq_len=max_seq_len)
    ox, om, od = jax.block_until_ready((ox, om, od))

    rx, rm, rd = _reference_pe(x, m, delta, t, D, max_seq_len)
    np.testing.assert_allclose(np.asarray(ox), rx, rtol=1e-5, atol=1e-5)
    np.testing.assert_allclose(np.asarray(om), rm, rtol=1e-5, atol=1e-5)
    np.testing.assert_allclose(np.asarray(od), rd, rtol=1e-5, atol=1e-5)
    print("KERNEL_OK")
</pallas_src>

<mosaic_0001>
module attributes {stable_mosaic.version = 11 : i64} {
  func.func @_pe_kernel(%arg0: i32, %arg1: memref<1x8x32xf32, #tpu.memory_space<vmem>>, %arg2: memref<1x8x32xf32, #tpu.memory_space<vmem>>, %arg3: memref<1x8x32xf32, #tpu.memory_space<vmem>>, %arg4: memref<1x8x1xf32, #tpu.memory_space<vmem>>, %arg5: memref<1x1x32xf32, #tpu.memory_space<vmem>>, %arg6: memref<1x8x32xf32, #tpu.memory_space<vmem>>, %arg7: memref<1x8x32xf32, #tpu.memory_space<vmem>>, %arg8: memref<1x8x32xf32, #tpu.memory_space<vmem>>) attributes {dimension_semantics = [#tpu.dimension_semantics<parallel>], iteration_bounds = array<i64: 2>, scalar_prefetch = 0 : i64, scratch_operands = 0 : i64, tpu.core_type = #tpu.core_type<tc>, window_params = [{transform_indices = @transform_0, window_bounds = array<i64: 1, 8, 32>}, {transform_indices = @transform_1, window_bounds = array<i64: 1, 8, 32>}, {transform_indices = @transform_2, window_bounds = array<i64: 1, 8, 32>}, {transform_indices = @transform_3, window_bounds = array<i64: 1, 8, 1>}, {pipeline_mode = #tpu.pipeline_mode<synchronous>, transform_indices = @transform_4, window_bounds = array<i64: 1, 1, 32>}, {transform_indices = @transform_5, window_bounds = array<i64: 1, 8, 32>}, {transform_indices = @transform_6, window_bounds = array<i64: 1, 8, 32>}, {transform_indices = @transform_7, window_bounds = array<i64: 1, 8, 32>}]} {
    %c0 = arith.constant 0 : index
    %c0_0 = arith.constant 0 : index
    %c0_1 = arith.constant 0 : index
    %0 = vector.load %arg4[%c0, %c0_0, %c0_1] : memref<1x8x1xf32, #tpu.memory_space<vmem>>, vector<1x8x1xf32>
    %c0_2 = arith.constant 0 : index
    %c0_3 = arith.constant 0 : index
    %c0_4 = arith.constant 0 : index
    %1 = vector.load %arg5[%c0_2, %c0_3, %c0_4] : memref<1x1x32xf32, #tpu.memory_space<vmem>>, vector<1x1x32xf32>
    %2 = vector.broadcast %0 : vector<1x8x1xf32> to vector<1x8x32xf32>
    %3 = vector.broadcast %1 : vector<1x1x32xf32> to vector<1x8x32xf32>
    %4 = arith.mulf %2, %3 : vector<1x8x32xf32>
    %5 = tpu.iota {dimensions = array<i32: 2>} : vector<1x8x32xi32>
    %c2_i32 = arith.constant 2 : i32
    %c0_i32 = arith.constant 0 : i32
    %6 = arith.cmpi eq, %c2_i32, %c0_i32 : i32
    %c1_i32 = arith.constant 1 : i32
    %7 = arith.select %6, %c1_i32, %c2_i32 : i32
    %8 = vector.broadcast %7 : i32 to vector<1x8x32xi32>
    %9 = arith.remsi %5, %8 : vector<1x8x32xi32>
    %c0_i32_5 = arith.constant 0 : i32
    %10 = vector.broadcast %c0_i32_5 : i32 to vector<1x8x32xi32>
    %11 = arith.cmpi ne, %9, %10 : vector<1x8x32xi32>
    %c0_i32_6 = arith.constant 0 : i32
    %12 = vector.broadcast %c0_i32_6 : i32 to vector<1x8x32xi32>
    %13 = arith.cmpi slt, %9, %12 : vector<1x8x32xi32>
    %c0_i32_7 = arith.constant 0 : i32
    %14 = arith.cmpi slt, %7, %c0_i32_7 : i32
    %15 = vector.broadcast %14 : i1 to vector<1x8x32xi1>
    %16 = vector.broadcast %15 : vector<1x8x32xi1> to vector<1x8x32xi1>
    %17 = arith.xori %13, %16 : vector<1x8x32xi1>
    %18 = arith.andi %17, %11 : vector<1x8x32xi1>
    %19 = vector.broadcast %7 : i32 to vector<1x8x32xi32>
    %20 = arith.addi %9, %19 : vector<1x8x32xi32>
    %21 = arith.select %18, %20, %9 : vector<1x8x32xi1>, vector<1x8x32xi32>
    %c0_i32_8 = arith.constant 0 : i32
    %22 = vector.broadcast %c0_i32_8 : i32 to vector<1x8x32xi32>
    %23 = arith.cmpi eq, %21, %22 : vector<1x8x32xi32>
    %24 = math.sin %4 : vector<1x8x32xf32>
    %25 = math.cos %4 : vector<1x8x32xf32>
    %26 = arith.select %23, %24, %25 : vector<1x8x32xi1>, vector<1x8x32xf32>
    %c0_9 = arith.constant 0 : index
    %c0_10 = arith.constant 0 : index
    %c0_11 = arith.constant 0 : index
    %27 = vector.load %arg1[%c0_9, %c0_10, %c0_11] : memref<1x8x32xf32, #tpu.memory_space<vmem>>, vector<1x8x32xf32>
    %cst = arith.constant 5.65685415 : f32
    %28 = vector.broadcast %cst : f32 to vector<1x8x32xf32>
    %29 = arith.mulf %27, %28 : vector<1x8x32xf32>
    %30 = arith.addf %29, %26 : vector<1x8x32xf32>
    %c0_12 = arith.constant 0 : index
    %c0_13 = arith.constant 0 : index
    %c0_14 = arith.constant 0 : index
    %31 = vector.load %arg6[%c0_12, %c0_13, %c0_14] : memref<1x8x32xf32, #tpu.memory_space<vmem>>, vector<1x8x32xf32>
    tpu.vector_store %arg6[%c0_12, %c0_13, %c0_14], %30 {strides = array<i32>} : memref<1x8x32xf32, #tpu.memory_space<vmem>>, vector<1x8x32xf32>,
    %c0_15 = arith.constant 0 : index
    %c0_16 = arith.constant 0 : index
    %c0_17 = arith.constant 0 : index
    %32 = vector.load %arg2[%c0_15, %c0_16, %c0_17] : memref<1x8x32xf32, #tpu.memory_space<vmem>>, vector<1x8x32xf32>
    %cst_18 = arith.constant 5.65685415 : f32
    %33 = vector.broadcast %cst_18 : f32 to vector<1x8x32xf32>
    %34 = arith.mulf %32, %33 : vector<1x8x32xf32>
    %35 = arith.addf %34, %26 : vector<1x8x32xf32>
    %c0_19 = arith.constant 0 : index
    %c0_20 = arith.constant 0 : index
    %c0_21 = arith.constant 0 : index
    %36 = vector.load %arg7[%c0_19, %c0_20, %c0_21] : memref<1x8x32xf32, #tpu.memory_space<vmem>>, vector<1x8x32xf32>
    tpu.vector_store %arg7[%c0_19, %c0_20, %c0_21], %35 {strides = array<i32>} : memref<1x8x32xf32, #tpu.memory_space<vmem>>, vector<1x8x32xf32>,
    %c0_22 = arith.constant 0 : index
    %c0_23 = arith.constant 0 : index
    %c0_24 = arith.constant 0 : index
    %37 = vector.load %arg3[%c0_22, %c0_23, %c0_24] : memref<1x8x32xf32, #tpu.memory_space<vmem>>, vector<1x8x32xf32>
    %cst_25 = arith.constant 5.65685415 : f32
    %38 = vector.broadcast %cst_25 : f32 to vector<1x8x32xf32>
    %39 = arith.mulf %37, %38 : vector<1x8x32xf32>
    %40 = arith.addf %39, %26 : vector<1x8x32xf32>
    %c0_26 = arith.constant 0 : index
    %c0_27 = arith.constant 0 : index
    %c0_28 = arith.constant 0 : index
    %41 = vector.load %arg8[%c0_26, %c0_27, %c0_28] : memref<1x8x32xf32, #tpu.memory_space<vmem>>, vector<1x8x32xf32>
    tpu.vector_store %arg8[%c0_26, %c0_27, %c0_28], %40 {strides = array<i32>} : memref<1x8x32xf32, #tpu.memory_space<vmem>>, vector<1x8x32xf32>,
    return
  }
  func.func @transform_0(%arg0: i32) -> (i32, i32, i32) {
    %c0_i32 = arith.constant 0 : i32
    %c0_i32_0 = arith.constant 0 : i32
    %c0_i32_1 = arith.constant 0 : i32
    return %arg0, %c0_i32, %c0_i32_0 : i32, i32, i32
  }
  func.func @transform_1(%arg0: i32) -> (i32, i32, i32) {
    %c0_i32 = arith.constant 0 : i32
    %c0_i32_0 = arith.constant 0 : i32
    %c0_i32_1 = arith.constant 0 : i32
    return %arg0, %c0_i32, %c0_i32_0 : i32, i32, i32
  }
  func.func @transform_2(%arg0: i32) -> (i32, i32, i32) {
    %c0_i32 = arith.constant 0 : i32
    %c0_i32_0 = arith.constant 0 : i32
    %c0_i32_1 = arith.constant 0 : i32
    return %arg0, %c0_i32, %c0_i32_0 : i32, i32, i32
  }
  func.func @transform_3(%arg0: i32) -> (i32, i32, i32) {
    %c0_i32 = arith.constant 0 : i32
    %c0_i32_0 = arith.constant 0 : i32
    %c0_i32_1 = arith.constant 0 : i32
    return %arg0, %c0_i32, %c0_i32_0 : i32, i32, i32
  }
  func.func @transform_4(%arg0: i32) -> (i32, i32, i32) {
    %c0_i32 = arith.constant 0 : i32
    %c0_i32_0 = arith.constant 0 : i32
    %c0_i32_1 = arith.constant 0 : i32
    %c0_i32_2 = arith.constant 0 : i32
    return %c0_i32, %c0_i32_0, %c0_i32_1 : i32, i32, i32
  }
  func.func @transform_5(%arg0: i32) -> (i32, i32, i32) {
    %c0_i32 = arith.constant 0 : i32
    %c0_i32_0 = arith.constant 0 : i32
    %c0_i32_1 = arith.constant 0 : i32
    return %arg0, %c0_i32, %c0_i32_0 : i32, i32, i32
  }
  func.func @transform_6(%arg0: i32) -> (i32, i32, i32) {
    %c0_i32 = arith.constant 0 : i32
    %c0_i32_0 = arith.constant 0 : i32
    %c0_i32_1 = arith.constant 0 : i32
    return %arg0, %c0_i32, %c0_i32_0 : i32, i32, i32
  }
  func.func @transform_7(%arg0: i32) -> (i32, i32, i32) {
    %c0_i32 = arith.constant 0 : i32
    %c0_i32_0 = arith.constant 0 : i32
    %c0_i32_1 = arith.constant 0 : i32
    return %arg0, %c0_i32, %c0_i32_0 : i32, i32, i32
  }
}

</mosaic_0001>

<bundles_post_ra>
// kernel: tpu_custom_call.1
= control target key start
LH: loop header
LB: loop body
LE: loop exit
PB: predicated region body
PF: predicated region fallthrough
CT: control target
= control target key end

     0   :  { %s1546_s0 = inlined_call_operand.vmem [shape: f32[2,8,32], index: 0, kind: input, shape index: {}]   ;;  %s1547_s1 = inlined_call_operand.hbm [shape: f32[2,8,32], index: 1, kind: input, shape index: {}]   ;;  %s1548_s2 = inlined_call_operand.hbm [shape: f32[2,8,32], index: 2, kind: input, shape index: {}]   ;;  %s1549_s3 = inlined_call_operand.vmem [shape: f32[2,8,1], index: 3, kind: input, shape index: {}]   ;;  %s1550_s4 = inlined_call_operand.vmem [shape: f32[1,1,32], index: 4, kind: input, shape index: {}]   ;;  %s1551_s5 = inlined_call_operand.hbm [shape: f32[2,8,32], index: 5, kind: output, shape index: {0}]   ;;  %s1552_s6 = inlined_call_operand.hbm [shape: f32[2,8,32], index: 6, kind: output, shape index: {1}]   ;;  %s1553_s7 = inlined_call_operand.hbm [shape: f32[2,8,32], index: 7, kind: output, shape index: {2}]  }
   0x1   :  { %1558 = sst [smem:[#allocation15_spill]] %s1546_s0 }
   0x2   :  { %1559 = sst [smem:[#allocation16_spill]] %s1547_s1 }
   0x3   :  { %1560 = sst [smem:[#allocation17_spill]] %s1548_s2 }
   0x4   :  { %1561 = sst [smem:[#allocation18_spill]] %s1549_s3 }
   0x5   :  { %13 = vsyncpa [#allocation3], 0 }
   0x6   :  { %15 = vsyncpa [#allocation3 + $0x1], 0 }
   0x7   :  { %16 = vsyncpa [#allocation6], 0 }
   0x8   :  { %18 = vsyncpa [#allocation6 + $0x1], 0 }
   0x9   :  { %19 = vsyncpa [#allocation4], 0 }
   0xa   :  { %21 = vsyncpa [#allocation4 + $0x1], 0 }
   0xb   :  { %22 = vsyncpa [#allocation9], 0 }
   0xc   :  { %24 = vsyncpa [#allocation9 + $0x1], 0  ;;  %s1214_s24 = smov 0   ;;  %s1216_s25 = smov 0  }
   0xd   :  { %s1218_s26 = smov 0   ;;  %s1220_s27 = smov 0  }
   0xe LB: > { %s1235_s28 = sadd.s32 4294967295, %s1160_s27   ;;  %s1554_s29 = sadd.s32 4294967294, %s1160_s27   ;;  %s1160_s27 = sphi %s1220_s27, %s1587_s27   ;;  %s1156_s26 = sphi %s1218_s26, %s1586_s26   ;;  %s1152_s25 = sphi %s1216_s25, %s1585_s25   ;;  %s1148_s24 = sphi %s1214_s24, %s1584_s24  }
   0xf   : > { %s1239_s30 = sadd.s32 1, %s1160_s27   ;;  %s63_s8 = sadd.s32 1, %s1156_s26 }
  0x10   : > { %s60_s9 = ssub.s32 %s1160_s27, %s1239_s30  ;;  %p70_p0 = scmp.ne.s32.totalorder %s1156_s26, %s1152_s25 }
  0x11   : > { %p61_p1 = scmp.eq.s32.totalorder %s60_s9, 0  ;;  %p71_p2 = scmp.eq.s32.totalorder %s1160_s27, 0 }
  0x12   : > { %p76_p3 = scmp.ne.s32.totalorder %s1152_s25, %s1148_s24  ;;  %p77_p4 = scmp.eq.s32.totalorder %s1235_s28, 0 }
  0x13   : > { %s1251_s10 = scalar_select %p61_p1, %s1156_s26, %s63_s8  }
  0x14   : > { %p1253_p5 = por %p71_p2, %p70_p0  ;;  %p1257_p6 = por %p77_p4, %p76_p3 }
  0x15   : > { %p173_p7 = scmp.eq.s32.totalorder %s1235_s28, 1  ;;  %p179_p8 = scmp.eq.s32.totalorder %s1554_s29, 1 }
  0x16   : > { %s1563_s12 = scalar_select %p1257_p6, 1, 0 }
  0x17   : > { %p924_p10 = scmp.lt.s32.totalorder %s1160_s27, 2  ;;  %p1266_p11 = por %p173_p7, %p70_p0 }
  0x18   : > { %p1270_p12 = por %p179_p8, %p76_p3  ;;  %s1275_s15 = sand.u32 1, %s1156_s26  }
  0x19   : > { %s1564_s13 = scalar_select %p1266_p11, 1, 0 }
  0x1a   : > { %s1565_s14 = scalar_select %p1270_p12, 1, 0 }
  0x1b   : > { %s865_s16 = sshll.u32 %s1160_s27, 7  ;;  %s1555_s17 = sshll.u32 %s1275_s15, 3 }
  0x1c   : > { %s1566_s1 = sld [smem:[#allocation16_spill]]  ;;  %s265_s21 = scalar_lea.vmem [#allocation2], %s1555_s17 }
  0x1d   : > { %s272_s22 = sshll.u32 %s265_s21, 4  ;;  %p1290_p13 = pnand %p924_p10, %p1253_p5  ;;  %s1294_s22 = int_to_ptr.vmem [resolvable:$true] %s272_s22 }
  0x1e   : > { %s262_s8 = scalar_lea.sflag [#allocation3], %s1275_s15 }
  0x1f   : > { %p972_p3 = pneg %p1290_p13 }
  0x22   : > { %s1284_s20 = scalar_lea.hbm %s1566_s1, %s865_s16  ;;  %s975_s19 = scalar_lea.hbm %s1566_s1, 256 }
  0x23   : > { %s970_s9 = scalar_lea.hbm %s1284_s20, 128  ;;  %p976_p5 = scmp.lt.u32.totalorder %s1284_s20, %s1566_s1 }
  0x24   : > { %p971_p2 = scmp.ne.s32.totalorder %s1284_s20, %s970_s9  ;;  %p977_p8 = scmp.lt.u32.totalorder %s975_s19, %s970_s9 }
  0x25   : > { %p979_p9 = scmp.lt.u32.totalorder %s970_s9, %s1284_s20 }
  0x26   : > { %p973_p4 = pnand %p972_p3, %p971_p2  ;;  %p978_p10 = por %p977_p8, %p976_p5 }
  0x28   : > { %p974_p7 = pneg %p973_p4  ;;  %p980_p0 = por %p979_p9, %p978_p10 }
  0x2a   : > { %p981_p1 = pnand %p980_p0, %p974_p7 }
  0x2c   : > { %984 = shalt.err (!%p981_p1)
}
  0x2d   : > { %s985_s17 = scalar_lea.vmem %s1294_s22, 128  ;;  %s1162_s11 = smov [#allocation2]  }
  0x2e   : > { %p986_p2 = scmp.ne.s32.totalorder %s1294_s22, %s985_s17  ;;  %s990_s18 = sshll.u32 %s1162_s11, 4  ;;  %s991_s18 = int_to_ptr.vmem [resolvable:$false] %s990_s18 }
  0x2f   : > { %s992_s29 = scalar_lea.vmem %s991_s18, 256  ;;  %p993_p11 = scmp.lt.s32.totalorder %s1294_s22, %s991_s18 }
  0x30   : > { %p988_p4 = pnand %p986_p2, %p972_p3  ;;  %p994_p5 = scmp.lt.s32.totalorder %s992_s29, %s985_s17 }
  0x32   : > { %p989_p12 = pneg %p988_p4  ;;  %p995_p8 = por %p994_p5, %p993_p11 }
  0x34   : > { %p996_p9 = pnand %p995_p8, %p989_p12 }
  0x36   : > { %999 = shalt.err (!%p996_p9)
}
  0x37   : > { %910 = dma.hbm_to_vmem [thread:$0]  (!%p1290_p13), %s1284_s20, 128, %s1294_s22, %s262_s8  }
  0x38   : > { %p1568_p0 = scmp.lt.s32.totalorder %s1160_s27, 3  ;;  %p1569_p1 = scmp.ge.s32.totalorder %s1160_s27, 1 }
  0x39   : > { %s1571_s2 = sld [smem:[#allocation17_spill]]  ;;  %s1572_s11 = sshll.u32 %s1275_s15, 3 }
  0x3a   : > { %p1328_p7 = pnand %p1569_p1, %p1568_p0  ;;  %s283_s18 = scalar_lea.vmem [#allocation5], %s1572_s11 }
  0x3b   : > { %s290_s29 = sshll.u32 %s283_s18, 4  ;;  %s280_s20 = scalar_lea.sflag [#allocation6], %s1275_s15  ;;  %s291_s29 = int_to_ptr.vmem [resolvable:$true] %s290_s29 }
  0x3c   : > { %s1570_s9 = scalar_select %p1328_p7, 1, 0 }
  0x3f   : > { %s1337_s21 = scalar_lea.hbm %s1571_s2, %s865_s16  ;;  %s1005_s16 = scalar_lea.hbm %s1571_s2, 256 }
  0x40   : > { %s1000_s22 = scalar_lea.hbm %s1337_s21, 128  ;;  %p1006_p2 = scmp.lt.u32.totalorder %s1337_s21, %s1571_s2 }
  0x41   : > { %p1001_p11 = scmp.ne.s32.totalorder %s1337_s21, %s1000_s22  ;;  %p1007_p4 = scmp.lt.u32.totalorder %s1005_s16, %s1000_s22 }
  0x42   : > { %p1009_p8 = scmp.lt.u32.totalorder %s1000_s22, %s1337_s21 }
  0x43   : > { %p1003_p12 = pnand %p1001_p11, %p972_p3  ;;  %p1008_p5 = por %p1007_p4, %p1006_p2 }
  0x45   : > { %p1004_p10 = pneg %p1003_p12  ;;  %p1010_p9 = por %p1009_p8, %p1008_p5 }
  0x47   : > { %p1011_p0 = pnand %p1010_p9, %p1004_p10 }
  0x49   : > { %1014 = shalt.err (!%p1011_p0)
}
  0x4a   : > { %s1015_s15 = scalar_lea.vmem %s291_s29, 128  ;;  %s1163_s11 = smov [#allocation5]  }
  0x4b   : > { %p1016_p1 = scmp.ne.s32.totalorder %s291_s29, %s1015_s15  ;;  %s1020_s1 = sshll.u32 %s1163_s11, 4  ;;  %s1021_s1 = int_to_ptr.vmem [resolvable:$false] %s1020_s1 }
  0x4c   : > { %s1022_s18 = scalar_lea.vmem %s1021_s1, 256  ;;  %p1023_p6 = scmp.lt.s32.totalorder %s291_s29, %s1021_s1 }
  0x4d   : > { %p1018_p11 = pnand %p1016_p1, %p972_p3  ;;  %p1024_p7 = scmp.lt.s32.totalorder %s1022_s18, %s1015_s15 }
  0x4f   : > { %p1019_p12 = pneg %p1018_p11  ;;  %p1025_p2 = por %p1024_p7, %p1023_p6 }
  0x51   : > { %p1026_p4 = pnand %p1025_p2, %p1019_p12 }
  0x53   : > { %1029 = shalt.err (!%p1026_p4)
}
  0x54   : > { %913 = dma.hbm_to_vmem [thread:$0]  (!%p1290_p13), %s1337_s21, 128, %s291_s29, %s280_s20  }
  0x55   : > { %p1573_p10 = scmp.ne.s32.totalorder %s1570_s9, 0 }
  0x56   : > { %s1364_s22 = sand.u32 (!%p1573_p10), 1, %s1152_s25   ;;  %p1574_p6 = scmp.ne.s32.totalorder (!%p1573_p10), %s1563_s12, 0 }
  0x57   : > { %306 = sbr.rel (%p1573_p10) target bundleno = 382 (0x17e), region = 40  ;;  %s1367_s8 = sshll.u32 (!%p1573_p10), %s1364_s22, 3 }
  0x58   : > { %s309_s16 = scalar_lea.sflag (!%p1573_p10), [#allocation3], %s1364_s22  ;;  %s312_s17 = scalar_lea.vmem (!%p1573_p10), [#allocation2], %s1367_s8 }
  0x5e   : > { %1131 = dma.done.wait (%p1574_p6), %s309_s16, 128  }
  0x5f   : > { %1133 = vsyncadd (%p1574_p6), %s309_s16, 4294967168  ;;  %s318_s23 = scalar_lea.sflag [#allocation6], %s1364_s22  ;;  %s321_s9 = scalar_lea.vmem [#allocation5], %s1367_s8 }
  0x60   : > { %1135 = dma.done.wait (%p1574_p6), %s318_s23, 128  }
  0x61   : > { %1137 = vsyncadd (%p1574_p6), %s318_s23, 4294967168  ;;  %p375_p13 = scmp.lt.s32.totalorder %s1235_s28, 1  ;;  %v1164_v0 = vmov 0   ;;  %s1575_s3 = sld [smem:[#allocation18_spill]]  ;;  %v876_v2 = vld [vmem:[%s1550_s4] ss:$0 sm:$0xff] }
  0x62   : > { %965 = vset.pattern.permute.xlu0 %v1164_v0  ;;  %v1165_v15 = vmov 683565275   ;;  %v1166_v17 = vmov 2475754826   ;;  %v1167_v20 = vmov 2131351028  }
  0x63   : > { %s1383_s21 = scalar_select %p375_p13, %s1235_s28, 1  ;;  %v1168_v23 = vmov 2102212464   ;;  %v1169_v26 = vmov 920167782  }
  0x64   : > { %v1170_v29 = vmov 1326507024   ;;  %s1576_s0 = sld [smem:[#allocation15_spill]]  ;;  %s888_s23 = sshll.u32 %s1235_s28, 7 }
  0x65   : > { %s874_s29 = sshll.u32 %s1383_s21, 3  ;;  %s1437_s11 = scalar_lea.hbm %s1552_s6, %s888_s23 }
  0x66   : > { %s374_s12 = scalar_lea.vmem [#allocation10], %s1367_s8  ;;  %p1580_p7 = scmp.ne.s32.totalorder %s1564_s13, 0 }
  0x67   : > { %s382_s15 = scalar_lea.vmem %s1575_s3, %s874_s29  ;;  %s683_s1 = sshll.u32 %s374_s12, 4  ;;  %s1454_s1 = int_to_ptr.vmem [resolvable:$true] %s683_s1 }
  0x68   : > { %v383_v1 = vld [vmem:[%s382_s15] sm:$0xff]  ;;  %s1452_s15 = scalar_lea.hbm %s1553_s7, %s888_s23  ;;  %s1171_s18 = smov [#allocation8]  }
  0x69   : > { %387 = vperm.xlu0 %965, %v383_v1  }
  0x6a   : > { %s378_s16 = scalar_lea.vmem %s1576_s0, %s874_s29  ;;  %s360_s29 = scalar_lea.vmem [#allocation7], %s1367_s8 }
  0x6b   : > { %s657_s20 = sshll.u32 %s360_s29, 4  ;;  %s1579_s0 = sand.u32 1, %s1235_s28   ;;  %s1447_s20 = int_to_ptr.vmem [resolvable:$true] %s657_s20 }
  0x6c   : > { %s1458_s2 = scalar_lea.sflag [#allocation9], %s1579_s0 }
  0xe8   : > { %v388_v3 = vpop.permute.xlu0 %387 }
  0xe9   : > { %v1394_v4 = vmul.f32 %v876_v2, %v388_v3 }
  0xeb   : > { %v415_v5 = vand.u32 2139095040, %v1394_v4  ;;  %v412_v9 = vand.u32 2147483647, %v1394_v4  ;;  %vm414_vm7 = vcmp.lt.s32.totalorder %v1394_v4, 0 }
  0xed   : > { %v416_v6 = vshrl.u32 %v415_v5, 23  ;;  %v419_v12 = vand.u32 8388607, %v412_v9  ;;  %vm413_vm8 = vcmp.le.f32.partialorder %v412_v9, 0.7853982 }
  0xef   : > { %v877_v7 = vadd.s32 4294967169, %v416_v6  ;;  %v420_v31 = vor.u32 8388608, %v419_v12 }
  0xf1   : > { %v422_v8 = vadd.s32 1, %v877_v7  ;;  %v460_v45 = vshll.u32 %v420_v31, 8  ;;  %v629_v31 = vld [vmem:[%s321_s9] sm:$0xff]  ;;  %s367_s9 = scalar_lea.vmem [#allocation8], %s1367_s8 }
  0xf2   : > { %s670_s21 = sshll.u32 %s367_s9, 4  ;;  %s1440_s21 = int_to_ptr.vmem [resolvable:$true] %s670_s21 }
  0xf3   : > { %vm423_vm0 = vcmp.gt.s32.totalorder %v422_v8, 0  ;;  %s1030_s3 = scalar_lea.vmem %s1440_s21, 128 }
  0xf4   : > { %v424_v10 = vsel %vm423_vm0, %v422_v8, 0  ;;  %vm504_vm0 = vweird.f32 %v1394_v4  ;;  %p1031_p3 = scmp.ne.s32.totalorder %s1440_s21, %s1030_s3 }
  0xf5   : > { %v426_v11 = vand.u32 31, %v424_v10  ;;  %v425_v14 = vshrl.u32 %v424_v10, 5 }
  0xf6   : > { %p1032_p5 = pnand %p1031_p3, %p1580_p7 }
  0xf7   : > { %v427_v13 = vsub.s32 32, %v426_v11  ;;  %v429_v16 = vshll.u32 %v1165_v15, %v426_v11  ;;  %v432_v18 = vshll.u32 %v1166_v17, %v426_v11  ;;  %v435_v22 = vshll.u32 %v1167_v20, %v426_v11 }
  0xf8   : > { %v438_v25 = vshll.u32 %v1168_v23, %v426_v11  ;;  %v441_v28 = vshll.u32 %v1169_v26, %v426_v11  ;;  %vm444_vm1 = vcmp.lt.s32.totalorder %v425_v14, 1  ;;  %vm447_vm2 = vcmp.lt.s32.totalorder %v425_v14, 4  ;;  %p1033_p8 = pneg %p1032_p5 }
  0xf9   : > { %v430_v19 = vshrl.u32 %v1166_v17, %v427_v13  ;;  %v433_v21 = vshrl.u32 %v1167_v20, %v427_v13  ;;  %v436_v24 = vshrl.u32 %v1168_v23, %v427_v13  ;;  %v439_v27 = vshrl.u32 %v1169_v26, %v427_v13 }
  0xfa   : > { %v442_v30 = vshrl.u32 %v1170_v29, %v427_v13  ;;  %v428_v40 = vshrl.u32 %v1165_v15, %v427_v13  ;;  %vm446_vm3 = vcmp.lt.s32.totalorder %v425_v14, 3  ;;  %vm445_vm4 = vcmp.lt.s32.totalorder %v425_v14, 2 }
  0xfb   : > { %v431_v32 = vor.u32 %v430_v19, %v429_v16  ;;  %v434_v33 = vor.u32 %v433_v21, %v432_v18  ;;  %v437_v34 = vor.u32 %v436_v24, %v435_v22  ;;  %v440_v35 = vor.u32 %v439_v27, %v438_v25 }
  0xfc   : > { %v443_v36 = vor.u32 %v442_v30, %v441_v28  ;;  %v397_v23 = vlaneseq  ;;  %v620_v28 = vld [vmem:[%s378_s16] sm:$0xff]  ;;  %s1034_s16 = sshll.u32 %s1171_s18, 4  ;;  %s1035_s16 = int_to_ptr.vmem [resolvable:$false] %s1034_s16 }
  0xfd   : > { %v449_v37 = vsel %vm447_vm2, %v437_v34, 2102212464  ;;  %v452_v38 = vsel %vm444_vm1, %v431_v32, %v434_v33  ;;  %v456_v39 = vsel %vm444_vm1, %v434_v33, %v437_v34  ;;  %v453_v41 = vsel %vm447_vm2, %v440_v35, 920167782  ;;  %v625_v30 = vld [vmem:[%s312_s17] sm:$0xff]  ;;  %s1445_s17 = scalar_lea.hbm %s1551_s5, %s888_s23  ;;  %p1037_p9 = scmp.lt.s32.totalorder %s1440_s21, %s1035_s16 }
  0xfe   : > { %v457_v42 = vsel %vm447_vm2, %v443_v36, 1326507024  ;;  %v454_v43 = vsel %vm446_vm3, %v437_v34, %v453_v41  ;;  %v448_v46 = vsel %vm444_vm1, %v428_v40, %v431_v32  ;;  %v450_v47 = vsel %vm446_vm3, %v434_v33, %v449_v37 }
  0xff   : > { %v458_v44 = vsel %vm446_vm3, %v440_v35, %v457_v42  ;;  %v455_v48 = vsel %vm445_vm4, %v452_v38, %v454_v43  ;;  %v451_v54 = vsel %vm445_vm4, %v448_v46, %v450_v47  ;;  %v398_v25 = vand.u32 127, %v397_v23 }
 0x100   : > { %v459_v49 = vsel %vm445_vm4, %v456_v39, %v458_v44  ;;  %v1403_v52 = vmul.u32.u64.low %v460_v45, %v455_v48  ;;  %v1404_v53 = vmul.u32.u64.high %v460_v45, %v455_v48, %v1403_v52  ;;  %v467_v56 = vmul.u32 %v460_v45, %v451_v54 }
 0x101   : > { %v1400_v50 = vmul.u32.u64.low %v460_v45, %v459_v49  ;;  %v1401_v51 = vmul.u32.u64.high %v460_v45, %v459_v49, %v1400_v50  ;;  %v403_v27 = vand.u32 1, %v398_v25  ;;  %v621_v34 = vmul.f32 5.656854, %v620_v28 }
 0x102   : > { %v470_v55 = vadd.s32 1, %v1404_v53  ;;  %v626_v37 = vmul.f32 5.656854, %v625_v30  ;;  %v630_v39 = vmul.f32 5.656854, %v629_v31  ;;  %vm623_vm1 = vcmask 261120  }
 0x103   : > { %vm469_vm5 = vc.u32 %v1401_v51, %v1403_v52  ;;  %v468_v5 = vadd.s32 %v1403_v52, %v1401_v51  ;;  %vm1423_vm9 = vcmp.eq.s32.totalorder %v403_v27, 0 }
 0x104   : > { %v471_v57 = vsel %vm469_vm5, %v470_v55, %v1404_v53 }
 0x105   : > { %v472_v58 = vadd.s32 %v471_v57, %v467_v56 }
 0x107   : > { %v473_v59 = vadd.s32 536870912, %v472_v58 }
 0x109   : > { %v474_v60 = vshrl.u32 %v473_v59, 30 }
 0x10b   : > { %v475_v61 = vshll.u32 %v474_v60, 30  ;;  %v498_v18 = vsub.s32 4, %v474_v60 }
 0x10d   : > { %v476_v62 = vsub.s32 %v472_v58, %v475_v61  ;;  %v499_v21 = vsel %vm414_vm7, %v498_v18, %v474_v60 }
 0x10e   : > { %v501_v24 = vsel %vm413_vm8, 0, %v499_v21 }
 0x10f   : > { %v478_v63 = vsub.s32 0, %v476_v62  ;;  %v505_v26 = vadd.s32 3, %v501_v24  ;;  %v609_v9 = vand.u32 3, %v501_v24 }
 0x111   : > { %v878_v0 = vmin.u32 %v478_v63, %v476_v62  ;;  %v506_v29 = vand.u32 3, %v505_v26  ;;  %vm614_vm11 = vcmp.eq.s32.totalorder %v609_v9, 2  ;;  %vm611_vm13 = vcmp.eq.s32.totalorder %v609_v9, 0 }
 0x112   : > { %vm610_vm15 = vcmp.lt.s32.totalorder %v609_v9, 2 }
 0x113   : > { %v480_v1 = vclz %v878_v0  ;;  %vm511_vm10 = vcmp.eq.s32.totalorder %v506_v29, 2  ;;  %vm508_vm12 = vcmp.eq.s32.totalorder %v506_v29, 0  ;;  %vm507_vm14 = vcmp.lt.s32.totalorder %v506_v29, 2 }
 0x115   : > { %v879_v2 = vadd.s32 4294967294, %v480_v1 }
 0x117   : > { %vm880_vm6 = vcmp.lt.s32.totalorder %v879_v2, 0 }
 0x118   : > { %v483_v3 = vsel %vm880_vm6, 0, %v879_v2 }
 0x119   : > { %v484_v6 = vsub.s32 32, %v483_v3  ;;  %v488_v7 = vsub.s32 4294967266, %v483_v3  ;;  %v485_v8 = vshll.u32 %v476_v62, %v483_v3 }
 0x11b   : > { %v486_v10 = vshrl.u32 %v468_v5, %v484_v6  ;;  %v489_v11 = vadd.s32 127, %v488_v7 }
 0x11d   : > { %v487_v12 = vor.u32 %v486_v10, %v485_v8  ;;  %v490_v13 = vshll.u32 %v489_v11, 23 }
 0x11f   : > { %v491_v14 = vor.u32 4788187, %v490_v13  ;;  %v494_v16 = vcvt.s32.f32 %v487_v12 }
 0x121   : > { %v492_v15 = vand.u32 2147483647, %v491_v14 }
 0x123   : > { %v495_v17 = vmul.f32 %v494_v16, %v492_v15 }
 0x125   : > { %v496_v19 = vxor.u32 2147483648, %v495_v17 }
 0x127   : > { %v497_v20 = vsel %vm414_vm7, %v496_v19, %v495_v17 }
 0x128   : > { %v500_v22 = vsel %vm413_vm8, %v1394_v4, %v497_v20 }
 0x129   : > { %966 = vcosq.f32 %v500_v22 }
 0x12a   : > { %968 = vsinq.f32 %v500_v22 }
 0x133   : > { %v967_v32 = vpop.eup %966 }
 0x134   : > { %v969_v33 = vpop.eup %968  ;;  %v512_v35 = vxor.u32 2147483648, %v967_v32 }
 0x135   : > { %v509_v38 = vxor.u32 2147483648, %v969_v33 }
 0x136   : > { %v513_v40 = vsel %vm511_vm10, %v512_v35, %v969_v33  ;;  %v616_v41 = vsel %vm614_vm11, %v512_v35, %v969_v33 }
 0x137   : > { %v510_v42 = vsel %vm508_vm12, %v967_v32, %v509_v38  ;;  %v613_v43 = vsel %vm611_vm13, %v967_v32, %v509_v38 }
 0x138   : > { %v514_v44 = vsel %vm507_vm14, %v510_v42, %v513_v40  ;;  %v617_v45 = vsel %vm610_vm15, %v613_v43, %v616_v41 }
 0x139   : > { %v515_v46 = vsel %vm504_vm0, nan, %v514_v44  ;;  %v618_v47 = vsel %vm504_vm0, nan, %v617_v45 }
 0x13a   : > { %v619_v48 = vsel %vm1423_vm9, %v515_v46, %v618_v47 }
 0x13b   : > { %v627_v4 = vadd.f32 %v626_v37, %v619_v48  ;;  %v622_v49 = vadd.f32 %v621_v34, %v619_v48  ;;  %v631_v50 = vadd.f32 %v630_v39, %v619_v48 }
 0x13d   : > { %628 = vst.msk [vmem:[%s367_s9] sm:$0xff] %vm623_vm1, %v627_v4  ;;  %624 = vst.msk [vmem:[%s360_s29] sm:$0xff] %vm623_vm1, %v622_v49  ;;  %s1036_s9 = scalar_lea.vmem %s1035_s16, 256 }
 0x13e   : > { %632 = vst.msk [vmem:[%s374_s12] sm:$0xff] %vm623_vm1, %v631_v50  ;;  %p1038_p0 = scmp.lt.s32.totalorder %s1036_s9, %s1030_s3 }
 0x140   : > { %p1039_p1 = por %p1038_p0, %p1037_p9 }
 0x142   : > { %p1040_p11 = pnand %p1039_p1, %p1033_p8 }
 0x144   : > { %1043 = shalt.err (!%p1040_p11)
}
 0x145   : > { %s1044_s0 = scalar_lea.hbm %s1437_s11, 128  ;;  %s1048_s29 = scalar_lea.hbm %s1552_s6, 256 }
 0x146   : > { %p1045_p12 = scmp.ne.s32.totalorder %s1437_s11, %s1044_s0  ;;  %p1049_p10 = scmp.lt.u32.totalorder %s1437_s11, %s1552_s6 }
 0x147   : > { %p1050_p6 = scmp.lt.u32.totalorder %s1048_s29, %s1044_s0  ;;  %p1052_p3 = scmp.lt.u32.totalorder %s1044_s0, %s1437_s11 }
 0x148   : > { %p1046_p2 = pnand %p1045_p12, %p1580_p7 }
 0x149   : > { %p1051_p13 = por %p1050_p6, %p1049_p10 }
 0x14a   : > { %p1047_p4 = pneg %p1046_p2 }
 0x14b   : > { %p1053_p5 = por %p1052_p3, %p1051_p13 }
 0x14d   : > { %p1054_p8 = pnand %p1053_p5, %p1047_p4 }
 0x14f   : > { %1057 = shalt.err (!%p1054_p8)
}
 0x150   : > { %902 = dma.vmem_to_hbm [thread:$0]  (%p1580_p7), %s1440_s21, 128, %s1437_s11, %s1458_s2  }
 0x151   : > { %s634_s3 = scalar_lea.sflag [#allocation4], %s1364_s22  ;;  %s1058_s19 = scalar_lea.vmem %s1447_s20, 128 }
 0x152   : > { %p1059_p9 = scmp.ne.s32.totalorder %s1447_s20, %s1058_s19  ;;  %s1172_s18 = smov [#allocation7]  }
 0x153   : > { %s1062_s16 = sshll.u32 %s1172_s18, 4  ;;  %s1063_s16 = int_to_ptr.vmem [resolvable:$false] %s1062_s16 }
 0x154   : > { %p1060_p0 = pnand %p1059_p9, %p1580_p7  ;;  %s1064_s9 = scalar_lea.vmem %s1063_s16, 256 }
 0x155   : > { %p1065_p11 = scmp.lt.s32.totalorder %s1447_s20, %s1063_s16  ;;  %p1066_p12 = scmp.lt.s32.totalorder %s1064_s9, %s1058_s19 }
 0x156   : > { %p1061_p1 = pneg %p1060_p0 }
 0x157   : > { %p1067_p2 = por %p1066_p12, %p1065_p11 }
 0x159   : > { %p1068_p4 = pnand %p1067_p2, %p1061_p1 }
 0x15b   : > { %1071 = shalt.err (!%p1068_p4)
}
 0x15c   : > { %s1072_s22 = scalar_lea.hbm %s1445_s17, 128  ;;  %s1076_s0 = scalar_lea.hbm %s1551_s5, 256 }
 0x15d   : > { %p1073_p10 = scmp.ne.s32.totalorder %s1445_s17, %s1072_s22  ;;  %p1077_p3 = scmp.lt.u32.totalorder %s1445_s17, %s1551_s5 }
 0x15e   : > { %p1078_p5 = scmp.lt.u32.totalorder %s1076_s0, %s1072_s22  ;;  %p1080_p9 = scmp.lt.u32.totalorder %s1072_s22, %s1445_s17 }
 0x15f   : > { %p1074_p6 = pnand %p1073_p10, %p1580_p7 }
 0x160   : > { %p1079_p8 = por %p1078_p5, %p1077_p3 }
 0x161   : > { %p1075_p13 = pneg %p1074_p6 }
 0x162   : > { %p1081_p0 = por %p1080_p9, %p1079_p8 }
 0x164   : > { %p1082_p1 = pnand %p1081_p0, %p1075_p13 }
 0x166   : > { %1085 = shalt.err (!%p1082_p1)
}
 0x167   : > { %901 = dma.vmem_to_hbm [thread:$0]  (%p1580_p7), %s1447_s20, 128, %s1445_s17, %s634_s3  }
 0x168   : > { %s1086_s29 = scalar_lea.vmem %s1454_s1, 128  ;;  %s1173_s12 = smov [#allocation10]  }
 0x169   : > { %p1087_p11 = scmp.ne.s32.totalorder %s1454_s1, %s1086_s29  ;;  %s1090_s8 = sshll.u32 %s1173_s12, 4  ;;  %s1091_s8 = int_to_ptr.vmem [resolvable:$false] %s1090_s8 }
 0x16a   : > { %s1092_s19 = scalar_lea.vmem %s1091_s8, 256  ;;  %p1093_p4 = scmp.lt.s32.totalorder %s1454_s1, %s1091_s8 }
 0x16b   : > { %p1088_p12 = pnand %p1087_p11, %p1580_p7  ;;  %p1094_p10 = scmp.lt.s32.totalorder %s1092_s19, %s1086_s29 }
 0x16d   : > { %p1089_p2 = pneg %p1088_p12  ;;  %p1095_p6 = por %p1094_p10, %p1093_p4 }
 0x16f   : > { %p1096_p13 = pnand %p1095_p6, %p1089_p2 }
 0x171   : > { %1099 = shalt.err (!%p1096_p13)
}
 0x172   : > { %s1100_s17 = scalar_lea.hbm %s1452_s15, 128  ;;  %s1104_s18 = scalar_lea.hbm %s1553_s7, 256 }
 0x173   : > { %p1101_p3 = scmp.ne.s32.totalorder %s1452_s15, %s1100_s17  ;;  %p1105_p9 = scmp.lt.u32.totalorder %s1452_s15, %s1553_s7 }
 0x174   : > { %p1106_p0 = scmp.lt.u32.totalorder %s1104_s18, %s1100_s17  ;;  %p1108_p11 = scmp.lt.u32.totalorder %s1100_s17, %s1452_s15 }
 0x175   : > { %p1102_p5 = pnand %p1101_p3, %p1580_p7 }
 0x176   : > { %p1107_p1 = por %p1106_p0, %p1105_p9 }
 0x177   : > { %p1103_p8 = pneg %p1102_p5 }
 0x178   : > { %p1109_p12 = por %p1108_p11, %p1107_p1 }
 0x17a   : > { %p1110_p2 = pnand %p1109_p12, %p1103_p8 }
 0x17c   : > { %1113 = shalt.err (!%p1110_p2)
}
 0x17d   : > { %903 = dma.vmem_to_hbm [thread:$0]  (%p1580_p7), %s1454_s1, 128, %s1452_s15, %s1458_s2  }
 0x17e PF: > { %s695_s22 = sand.u32 1, %s1148_s24   ;;  %p1581_p4 = scmp.ne.s32.totalorder %s1565_s14, 0 }
 0x17f   : > { %p1582_p10 = scmp.ge.s32.totalorder %s1160_s27, 2  ;;  %s696_s21 = scalar_lea.sflag [#allocation4], %s695_s22 }
 0x181   : > { %p915_p6 = pnand %p1582_p10, %p1581_p4 }
 0x183   : > { %1139 = dma.done.wait (!%p915_p6), %s696_s21, 128  }
 0x184   : > { %1141 = vsyncadd (!%p915_p6), %s696_s21, 4294967168  ;;  %s1583_s11 = sadd.s32 4294967294, %s1160_s27  }
 0x185   : > { %s704_s0 = sand.u32 1, %s1583_s11  }
 0x186   : > { %s705_s28 = scalar_lea.sflag [#allocation9], %s704_s0 }
 0x187   : > { %1143 = dma.done.wait (!%p915_p6), %s705_s28, 256  }
 0x188   : > { %1145 = vsyncadd (!%p915_p6), %s705_s28, 4294967040  ;;  %p27_p7 = scmp.ge.s32.totalorder %s1239_s30, 4   ;;  %s1584_s24 = smov %s1152_s25 }
 0x189   : > { %s1585_s25 = smov %s1156_s26  ;;  %s1586_s26 = smov %s1251_s10 }
 0x18a   : > { %s1587_s27 = smov %s1239_s30  ;;  %29 = sbr.rel (!%p27_p7) target bundleno = 14 (0xe), region = 136 }
 0x191   :  { %719 = vsyncpa [#allocation3], 1 }
 0x192   :  { %721 = vsyncpa [#allocation3 + $0x1], 1 }
 0x193   :  { %722 = vsyncpa [#allocation6], 1 }
 0x194   :  { %724 = vsyncpa [#allocation6 + $0x1], 1 }
 0x195   :  { %725 = vsyncpa [#allocation4], 1 }
 0x196   :  { %727 = vsyncpa [#allocation4 + $0x1], 1 }
 0x197   :  { %728 = vsyncpa [#allocation9], 1 }
 0x198   :  { %730 = vsyncpa [#allocation9 + $0x1], 1 }

</bundles_post_ra>
